<compile_context>
chip_gen: v7x
topology: tpu7x:2x2x1
jax: 0.10.0
libtpu: 0.0.40
codegen_flags: <defaults>
</compile_context>

<pallas_src>
import jax
import jax.numpy as jnp
from jax.experimental import pallas as pl
from jax.experimental.pallas import tpu as pltpu

LANE = 128          # lane width / MXU alignment
TILE_B_MAX = 2048   # batch rows per grid step (sized for v7x VMEM budget)


def _round_up(n, m):
    return ((n + m - 1) // m) * m


def _mlp_kernel(x_ref,
                w1_ref, b1_ref,
                w2_ref, b2_ref,
                w3_ref, b3_ref,
                w4_ref, b4_ref,
                out_ref):
    """One batch tile of the 4-layer MLP. Weights stay resident in VMEM."""
    h = jnp.dot(x_ref[...], w1_ref[...],
                preferred_element_type=jnp.float32) + b1_ref[...]
    h = jax.nn.sigmoid(h)

    # corresponds to the `for i in range(1):` loop in the PyTorch module
    h = jnp.dot(h.astype(jnp.bfloat16), w2_ref[...],
                preferred_element_type=jnp.float32) + b2_ref[...]
    h = jax.nn.sigmoid(h)

    h = jnp.dot(h.astype(jnp.bfloat16), w3_ref[...],
                preferred_element_type=jnp.float32) + b3_ref[...]
    h = jax.nn.sigmoid(h)

    out = jnp.dot(h.astype(jnp.bfloat16), w4_ref[...],
                  preferred_element_type=jnp.float32) + b4_ref[...]
    out_ref[...] = out.astype(out_ref.dtype)


def prepare_params(params):
    """One-time prep from PyTorch Linear layout (w: (out,in), b: (out,)).

    Transposes to (in, out), zero-pads every feature dim to a multiple of 128,
    casts weights to bf16 and biases to (1, out_pad) f32 rows.
    """
    prepped = []
    for i in (1, 2, 3, 4):
        w = params[f"w{i}"]
        b = params[f"b{i}"]
        fan_out, fan_in = w.shape
        in_pad = _round_up(fan_in, LANE)
        out_pad = _round_up(fan_out, LANE)
        wt = jnp.zeros((in_pad, out_pad), jnp.float32)
        wt = wt.at[:fan_in, :fan_out].set(w.T)
        bp = jnp.zeros((1, out_pad), jnp.float32).at[0, :fan_out].set(b)
        prepped.append(wt.astype(jnp.bfloat16))
        prepped.append(bp)
    return tuple(prepped)


def net_forward(x, prepped, out_size):
    """x: (B, input_size) f32; prepped: output of prepare_params."""
    B, in_size = x.shape
    in_pad = prepped[0].shape[0]      # padded input feature dim (lane-aligned)
    out_pad = prepped[-2].shape[1]    # padded output feature dim (lane-aligned)

    tile_b = min(TILE_B_MAX, _round_up(B, 16))
    b_pad = _round_up(B, tile_b)

    # Zero-pad batch & features, cast the x stream to bf16 at the boundary.
    xp = jnp.zeros((b_pad, in_pad), jnp.bfloat16)
    xp = xp.at[:B, :in_size].set(x.astype(jnp.bfloat16))

    const_map = lambda i: (0, 0)
    in_specs = [pl.BlockSpec((tile_b, in_pad), lambda i: (i, 0))]
    for p in prepped:  # weights & biases: full block, resident across grid
        in_specs.append(pl.BlockSpec(p.shape, const_map))

    out_padded = pl.pallas_call(
        _mlp_kernel,
        out_shape=jax.ShapeDtypeStruct((b_pad, out_pad), jnp.float32),
        grid=(b_pad // tile_b,),
        in_specs=in_specs,
        out_specs=pl.BlockSpec((tile_b, out_pad), lambda i: (i, 0)),
        compiler_params=pltpu.CompilerParams(
            dimension_semantics=("parallel",)),
    )(xp, *prepped)

    return out_padded[:B, :out_size]


def _init_params(key, input_size, output_size):
    """Deterministic init mimicking nn.Linear's U(-1/sqrt(fan_in), 1/sqrt(fan_in))."""
    sizes = [(128, input_size), (64, 128), (32, 64), (output_size, 32)]
    params = {}
    for i, (fan_out, fan_in) in enumerate(sizes, start=1):
        key, kw, kb = jax.random.split(key, 3)
        bound = 1.0 / jnp.sqrt(fan_in)
        params[f"w{i}"] = jax.random.uniform(
            kw, (fan_out, fan_in), jnp.float32, -bound, bound)
        params[f"b{i}"] = jax.random.uniform(
            kb, (fan_out,), jnp.float32, -bound, bound)
    return params


def _reference(x, params):
    h = jax.nn.sigmoid(x @ params["w1"].T + params["b1"])
    h = jax.nn.sigmoid(h @ params["w2"].T + params["b2"])
    h = jax.nn.sigmoid(h @ params["w3"].T + params["b3"])
    return h @ params["w4"].T + params["b4"]


if __name__ == "__main__":
    key = jax.random.PRNGKey(0)
    batch, input_size, output_size = 8, 32, 8

    key, kx = jax.random.split(key)
    x = jax.random.normal(kx, (batch, input_size), jnp.float32)
    params = _init_params(key, input_size, output_size)

    prepped = prepare_params(params)          # one-time weight prep
    out = net_forward(x, prepped, output_size)
    out = jax.block_until_ready(out)

    ref = _reference(x, params)               # f32 reference
    assert out.shape == (batch, output_size)
    # Tolerance loosened for the bf16 input/weight cast (f32 accumulation).
    assert jnp.allclose(out, ref, atol=3e-2, rtol=3e-2), "mismatch vs reference"

    print("KERNEL_OK")
</pallas_src>

<mosaic_0001>
module attributes {stable_mosaic.version = 11 : i64} {
  func.func @_mlp_kernel(%arg0: i32, %arg1: memref<16x128xbf16, #tpu.memory_space<vmem>>, %arg2: memref<128x128xbf16, #tpu.memory_space<vmem>>, %arg3: memref<1x128xf32, #tpu.memory_space<vmem>>, %arg4: memref<128x128xbf16, #tpu.memory_space<vmem>>, %arg5: memref<1x128xf32, #tpu.memory_space<vmem>>, %arg6: memref<128x128xbf16, #tpu.memory_space<vmem>>, %arg7: memref<1x128xf32, #tpu.memory_space<vmem>>, %arg8: memref<128x128xbf16, #tpu.memory_space<vmem>>, %arg9: memref<1x128xf32, #tpu.memory_space<vmem>>, %arg10: memref<16x128xf32, #tpu.memory_space<vmem>>) attributes {dimension_semantics = [#tpu.dimension_semantics<parallel>], iteration_bounds = array<i64: 1>, scalar_prefetch = 0 : i64, scratch_operands = 0 : i64, tpu.core_type = #tpu.core_type<tc>, window_params = [{transform_indices = @transform_0, window_bounds = array<i64: 16, 128>}, {pipeline_mode = #tpu.pipeline_mode<synchronous>, transform_indices = @transform_1, window_bounds = array<i64: 128, 128>}, {pipeline_mode = #tpu.pipeline_mode<synchronous>, transform_indices = @transform_2, window_bounds = array<i64: 1, 128>}, {pipeline_mode = #tpu.pipeline_mode<synchronous>, transform_indices = @transform_3, window_bounds = array<i64: 128, 128>}, {pipeline_mode = #tpu.pipeline_mode<synchronous>, transform_indices = @transform_4, window_bounds = array<i64: 1, 128>}, {pipeline_mode = #tpu.pipeline_mode<synchronous>, transform_indices = @transform_5, window_bounds = array<i64: 128, 128>}, {pipeline_mode = #tpu.pipeline_mode<synchronous>, transform_indices = @transform_6, window_bounds = array<i64: 1, 128>}, {pipeline_mode = #tpu.pipeline_mode<synchronous>, transform_indices = @transform_7, window_bounds = array<i64: 128, 128>}, {pipeline_mode = #tpu.pipeline_mode<synchronous>, transform_indices = @transform_8, window_bounds = array<i64: 1, 128>}, {transform_indices = @transform_9, window_bounds = array<i64: 16, 128>}]} {
    %c0 = arith.constant 0 : index
    %c0_0 = arith.constant 0 : index
    %0 = vector.load %arg1[%c0, %c0_0] : memref<16x128xbf16, #tpu.memory_space<vmem>>, vector<16x128xbf16>
    %c0_1 = arith.constant 0 : index
    %c0_2 = arith.constant 0 : index
    %1 = vector.load %arg2[%c0_1, %c0_2] : memref<128x128xbf16, #tpu.memory_space<vmem>>, vector<128x128xbf16>
    %cst = arith.constant dense<0.000000e+00> : vector<16x128xf32>
    %2 = tpu.matmul %0, %1, %cst {dimension_numbers = #tpu.dot_dimension_numbers<[1], [0], [0], [1], [0, 0, 1, 1], [], []>} : vector<16x128xbf16>, vector<128x128xbf16>, vector<16x128xf32> -> vector<16x128xf32>
    %c0_3 = arith.constant 0 : index
    %c0_4 = arith.constant 0 : index
    %3 = vector.load %arg3[%c0_3, %c0_4] : memref<1x128xf32, #tpu.memory_space<vmem>>, vector<1x128xf32>
    %4 = vector.broadcast %3 : vector<1x128xf32> to vector<16x128xf32>
    %5 = arith.addf %2, %4 : vector<16x128xf32>
    %6 = arith.negf %5 : vector<16x128xf32>
    %7 = math.exp %6 : vector<16x128xf32>
    %cst_5 = arith.constant 1.000000e+00 : f32
    %8 = vector.broadcast %cst_5 : f32 to vector<16x128xf32>
    %9 = arith.addf %8, %7 : vector<16x128xf32>
    %10 = arith.divf %8, %9 : vector<16x128xf32>
    %11 = arith.truncf %10 : vector<16x128xf32> to vector<16x128xbf16>
    %c0_6 = arith.constant 0 : index
    %c0_7 = arith.constant 0 : index
    %12 = vector.load %arg4[%c0_6, %c0_7] : memref<128x128xbf16, #tpu.memory_space<vmem>>, vector<128x128xbf16>
    %cst_8 = arith.constant dense<0.000000e+00> : vector<16x128xf32>
    %13 = tpu.matmul %11, %12, %cst_8 {dimension_numbers = #tpu.dot_dimension_numbers<[1], [0], [0], [1], [0, 0, 1, 1], [], []>} : vector<16x128xbf16>, vector<128x128xbf16>, vector<16x128xf32> -> vector<16x128xf32>
    %c0_9 = arith.constant 0 : index
    %c0_10 = arith.constant 0 : index
    %14 = vector.load %arg5[%c0_9, %c0_10] : memref<1x128xf32, #tpu.memory_space<vmem>>, vector<1x128xf32>
    %15 = vector.broadcast %14 : vector<1x128xf32> to vector<16x128xf32>
    %16 = arith.addf %13, %15 : vector<16x128xf32>
    %17 = arith.negf %16 : vector<16x128xf32>
    %18 = math.exp %17 : vector<16x128xf32>
    %cst_11 = arith.constant 1.000000e+00 : f32
    %19 = vector.broadcast %cst_11 : f32 to vector<16x128xf32>
    %20 = arith.addf %19, %18 : vector<16x128xf32>
    %21 = arith.divf %19, %20 : vector<16x128xf32>
    %22 = arith.truncf %21 : vector<16x128xf32> to vector<16x128xbf16>
    %c0_12 = arith.constant 0 : index
    %c0_13 = arith.constant 0 : index
    %23 = vector.load %arg6[%c0_12, %c0_13] : memref<128x128xbf16, #tpu.memory_space<vmem>>, vector<128x128xbf16>
    %cst_14 = arith.constant dense<0.000000e+00> : vector<16x128xf32>
    %24 = tpu.matmul %22, %23, %cst_14 {dimension_numbers = #tpu.dot_dimension_numbers<[1], [0], [0], [1], [0, 0, 1, 1], [], []>} : vector<16x128xbf16>, vector<128x128xbf16>, vector<16x128xf32> -> vector<16x128xf32>
    %c0_15 = arith.constant 0 : index
    %c0_16 = arith.constant 0 : index
    %25 = vector.load %arg7[%c0_15, %c0_16] : memref<1x128xf32, #tpu.memory_space<vmem>>, vector<1x128xf32>
    %26 = vector.broadcast %25 : vector<1x128xf32> to vector<16x128xf32>
    %27 = arith.addf %24, %26 : vector<16x128xf32>
    %28 = arith.negf %27 : vector<16x128xf32>
    %29 = math.exp %28 : vector<16x128xf32>
    %cst_17 = arith.constant 1.000000e+00 : f32
    %30 = vector.broadcast %cst_17 : f32 to vector<16x128xf32>
    %31 = arith.addf %30, %29 : vector<16x128xf32>
    %32 = arith.divf %30, %31 : vector<16x128xf32>
    %33 = arith.truncf %32 : vector<16x128xf32> to vector<16x128xbf16>
    %c0_18 = arith.constant 0 : index
    %c0_19 = arith.constant 0 : index
    %34 = vector.load %arg8[%c0_18, %c0_19] : memref<128x128xbf16, #tpu.memory_space<vmem>>, vector<128x128xbf16>
    %cst_20 = arith.constant dense<0.000000e+00> : vector<16x128xf32>
    %35 = tpu.matmul %33, %34, %cst_20 {dimension_numbers = #tpu.dot_dimension_numbers<[1], [0], [0], [1], [0, 0, 1, 1], [], []>} : vector<16x128xbf16>, vector<128x128xbf16>, vector<16x128xf32> -> vector<16x128xf32>
    %c0_21 = arith.constant 0 : index
    %c0_22 = arith.constant 0 : index
    %36 = vector.load %arg9[%c0_21, %c0_22] : memref<1x128xf32, #tpu.memory_space<vmem>>, vector<1x128xf32>
    %37 = vector.broadcast %36 : vector<1x128xf32> to vector<16x128xf32>
    %38 = arith.addf %35, %37 : vector<16x128xf32>
    %c0_23 = arith.constant 0 : index
    %c0_24 = arith.constant 0 : index
    %39 = vector.load %arg10[%c0_23, %c0_24] : memref<16x128xf32, #tpu.memory_space<vmem>>, vector<16x128xf32>
    tpu.vector_store %arg10[%c0_23, %c0_24], %38 {strides = array<i32>} : memref<16x128xf32, #tpu.memory_space<vmem>>, vector<16x128xf32>,
    return
  }
  func.func @transform_0(%arg0: i32) -> (i32, i32) {
    %c0_i32 = arith.constant 0 : i32
    %c0_i32_0 = arith.constant 0 : i32
    return %arg0, %c0_i32 : i32, i32
  }
  func.func @transform_1(%arg0: i32) -> (i32, i32) {
    %c0_i32 = arith.constant 0 : i32
    %c0_i32_0 = arith.constant 0 : i32
    %c0_i32_1 = arith.constant 0 : i32
    return %c0_i32, %c0_i32_0 : i32, i32
  }
  func.func @transform_2(%arg0: i32) -> (i32, i32) {
    %c0_i32 = arith.constant 0 : i32
    %c0_i32_0 = arith.constant 0 : i32
    %c0_i32_1 = arith.constant 0 : i32
    return %c0_i32, %c0_i32_0 : i32, i32
  }
  func.func @transform_3(%arg0: i32) -> (i32, i32) {
    %c0_i32 = arith.constant 0 : i32
    %c0_i32_0 = arith.constant 0 : i32
    %c0_i32_1 = arith.constant 0 : i32
    return %c0_i32, %c0_i32_0 : i32, i32
  }
  func.func @transform_4(%arg0: i32) -> (i32, i32) {
    %c0_i32 = arith.constant 0 : i32
    %c0_i32_0 = arith.constant 0 : i32
    %c0_i32_1 = arith.constant 0 : i32
    return %c0_i32, %c0_i32_0 : i32, i32
  }
  func.func @transform_5(%arg0: i32) -> (i32, i32) {
    %c0_i32 = arith.constant 0 : i32
    %c0_i32_0 = arith.constant 0 : i32
    %c0_i32_1 = arith.constant 0 : i32
    return %c0_i32, %c0_i32_0 : i32, i32
  }
  func.func @transform_6(%arg0: i32) -> (i32, i32) {
    %c0_i32 = arith.constant 0 : i32
    %c0_i32_0 = arith.constant 0 : i32
    %c0_i32_1 = arith.constant 0 : i32
    return %c0_i32, %c0_i32_0 : i32, i32
  }
  func.func @transform_7(%arg0: i32) -> (i32, i32) {
    %c0_i32 = arith.constant 0 : i32
    %c0_i32_0 = arith.constant 0 : i32
    %c0_i32_1 = arith.constant 0 : i32
    return %c0_i32, %c0_i32_0 : i32, i32
  }
  func.func @transform_8(%arg0: i32) -> (i32, i32) {
    %c0_i32 = arith.constant 0 : i32
    %c0_i32_0 = arith.constant 0 : i32
    %c0_i32_1 = arith.constant 0 : i32
    return %c0_i32, %c0_i32_0 : i32, i32
  }
  func.func @transform_9(%arg0: i32) -> (i32, i32) {
    %c0_i32 = arith.constant 0 : i32
    %c0_i32_0 = arith.constant 0 : i32
    return %arg0, %c0_i32 : i32, i32
  }
}

</mosaic_0001>

<bundles_post_ra>
// kernel: tpu_custom_call.1
= control target key start
LH: loop header
LB: loop body
LE: loop exit
PB: predicated region body
PF: predicated region fallthrough
CT: control target
= control target key end

     0   :  { %14 = vsyncpa [#allocation3], 0  ;;  %s1201_s0 = inlined_call_operand.hbm [shape: bf16[16,128], index: 0, kind: input, shape index: {}]   ;;  %s1202_s1 = inlined_call_operand.hbm [shape: bf16[128,128], index: 1, kind: input, shape index: {}]   ;;  %s1203_s2 = inlined_call_operand.vmem [shape: f32[1,128], index: 2, kind: input, shape index: {}]   ;;  %s1204_s3 = inlined_call_operand.hbm [shape: bf16[128,128], index: 3, kind: input, shape index: {}]   ;;  %s1205_s4 = inlined_call_operand.vmem [shape: f32[1,128], index: 4, kind: input, shape index: {}]   ;;  %s1206_s5 = inlined_call_operand.hbm [shape: bf16[128,128], index: 5, kind: input, shape index: {}]   ;;  %s1207_s6 = inlined_call_operand.vmem [shape: f32[1,128], index: 6, kind: input, shape index: {}]   ;;  %s1208_s7 = inlined_call_operand.hbm [shape: bf16[128,128], index: 7, kind: input, shape index: {}]   ;;  %s1209_s8 = inlined_call_operand.vmem [shape: f32[1,128], index: 8, kind: input, shape index: {}]   ;;  %s1210_s9 = inlined_call_operand.hbm [shape: f32[16,128], index: 9, kind: output, shape index: {}]  }
   0x1   :  { %15 = vsyncpa [#allocation6], 0 }
   0x2   :  { %16 = vsyncpa [#allocation9], 0 }
   0x3   :  { %17 = vsyncpa [#allocation4], 0  ;;  %s986_s30 = smov [#allocation5]   ;;  %s987_s11 = smov [#allocation8]  }
   0x4   :  { %s35_s10 = sshll.u32 %s986_s30, 4  ;;  %s63_s12 = sshll.u32 %s987_s11, 4  ;;  %s36_s10 = int_to_ptr.vmem [resolvable:$true] %s35_s10  ;;  %s1048_s12 = int_to_ptr.vmem [resolvable:$true] %s63_s12 }
   0x5   :  { %s846_s15 = scalar_lea.hbm %s1202_s1, 1024 }
   0x6   :  { %p847_p0 = scmp.ne.s32.totalorder %s1202_s1, %s846_s15  ;;  %p850_p1 = scmp.lt.u32.totalorder %s846_s15, %s1202_s1 }
   0x8   :  { %p852_p2 = pnand %p850_p1, %p847_p0 }
   0xa   :  { %855 = shalt.err (!%p852_p2)
}
   0xb   :  { %s856_s20 = scalar_lea.vmem %s36_s10, 1024  ;;  %p861_p4 = scmp.lt.s32.totalorder %s36_s10, %s36_s10 }
   0xc   :  { %p857_p3 = scmp.ne.s32.totalorder %s36_s10, %s856_s20  ;;  %p862_p5 = scmp.lt.s32.totalorder %s856_s20, %s856_s20 }
   0xe   :  { %p863_p6 = por %p862_p5, %p861_p4 }
  0x10   :  { %p864_p7 = pnand %p863_p6, %p857_p3 }
  0x12   :  { %867 = shalt.err (!%p864_p7)
}
  0x13   :  { %s988_s21 = smov 64   ;;  %s989_s22 = smov 4  }
  0x14   :  { %41 = dma.hbm_to_vmem [thread:$0]  %s1202_s1, 1024, %s36_s10, [#allocation6], %s988_s21, %s988_s21, %s989_s22  }
  0x15   :  { %s868_s27 = scalar_lea.hbm %s1206_s5, 1024 }
  0x16   :  { %p869_p8 = scmp.ne.s32.totalorder %s1206_s5, %s868_s27  ;;  %p872_p9 = scmp.lt.u32.totalorder %s868_s27, %s1206_s5 }
  0x18   :  { %p874_p10 = pnand %p872_p9, %p869_p8 }
  0x1a   :  { %877 = shalt.err (!%p874_p10)
}
  0x1b   :  { %s878_s13 = scalar_lea.vmem %s1048_s12, 1024  ;;  %p883_p12 = scmp.lt.s32.totalorder %s1048_s12, %s1048_s12 }
  0x1c   :  { %p879_p11 = scmp.ne.s32.totalorder %s1048_s12, %s878_s13  ;;  %p884_p13 = scmp.lt.s32.totalorder %s878_s13, %s878_s13 }
  0x1e   :  { %p885_p0 = por %p884_p13, %p883_p12 }
  0x20   :  { %p886_p1 = pnand %p885_p0, %p879_p11 }
  0x22   :  { %889 = shalt.err (!%p886_p1)
}
  0x23   :  { %69 = dma.hbm_to_vmem [thread:$0]  %s1206_s5, 1024, %s1048_s12, [#allocation9], %s988_s21, %s988_s21, %s989_s22  }
  0x24   :  { %s990_s14 = smov [#allocation2]   ;;  %s991_s16 = smov [#allocation7]  }
  0x25   :  { %s23_s15 = sshll.u32 %s990_s14, 4  ;;  %s49_s17 = sshll.u32 %s991_s16, 4  ;;  %s24_s15 = int_to_ptr.vmem [resolvable:$true] %s23_s15  ;;  %s1085_s17 = int_to_ptr.vmem [resolvable:$true] %s49_s17 }
  0x26   :  { %s890_s20 = scalar_lea.hbm %s1201_s0, 128 }
  0x27   :  { %p891_p2 = scmp.ne.s32.totalorder %s1201_s0, %s890_s20  ;;  %p894_p3 = scmp.lt.u32.totalorder %s890_s20, %s1201_s0 }
  0x29   :  { %p896_p4 = pnand %p894_p3, %p891_p2 }
  0x2b   :  { %899 = shalt.err (!%p896_p4)
}
  0x2c   :  { %s900_s5 = scalar_lea.vmem %s24_s15, 128  ;;  %p905_p6 = scmp.lt.s32.totalorder %s24_s15, %s24_s15 }
  0x2d   :  { %p901_p5 = scmp.ne.s32.totalorder %s24_s15, %s900_s5  ;;  %p906_p7 = scmp.lt.s32.totalorder %s900_s5, %s900_s5 }
  0x2f   :  { %p907_p8 = por %p906_p7, %p905_p6 }
  0x31   :  { %p908_p9 = pnand %p907_p8, %p901_p5 }
  0x33   :  { %911 = shalt.err (!%p908_p9)
}
  0x34   :  { %29 = dma.hbm_to_vmem [thread:$0]  %s1201_s0, 128, %s24_s15, [#allocation3], %s988_s21, %s988_s21, %s989_s22  }
  0x35   :  { %s912_s30 = scalar_lea.hbm %s1204_s3, 1024 }
  0x36   :  { %p913_p10 = scmp.ne.s32.totalorder %s1204_s3, %s912_s30  ;;  %p916_p11 = scmp.lt.u32.totalorder %s912_s30, %s1204_s3 }
  0x38   :  { %p918_p12 = pnand %p916_p11, %p913_p10 }
  0x3a   :  { %921 = shalt.err (!%p918_p12)
}
  0x3b   :  { %s922_s14 = scalar_lea.vmem %s1085_s17, 1024  ;;  %p927_p0 = scmp.lt.s32.totalorder %s1085_s17, %s1085_s17 }
  0x3c   :  { %p923_p13 = scmp.ne.s32.totalorder %s1085_s17, %s922_s14  ;;  %p928_p1 = scmp.lt.s32.totalorder %s922_s14, %s922_s14 }
  0x3e   :  { %p929_p2 = por %p928_p1, %p927_p0 }
  0x40   :  { %p930_p3 = pnand %p929_p2, %p923_p13 }
  0x42   :  { %933 = shalt.err (!%p930_p3)
}
  0x43   :  { %55 = dma.hbm_to_vmem [thread:$0]  %s1204_s3, 1024, %s1085_s17, [#allocation6], %s988_s21, %s988_s21, %s989_s22  }
  0x44   :  { %s992_s16 = smov [#allocation10]   ;;  %s934_s23 = scalar_lea.hbm %s1208_s7, 1024 }
  0x45   :  { %s77_s18 = sshll.u32 %s992_s16, 4  ;;  %p935_p4 = scmp.ne.s32.totalorder %s1208_s7, %s934_s23  ;;  %s78_s18 = int_to_ptr.vmem [resolvable:$true] %s77_s18 }
  0x46   :  { %p938_p5 = scmp.lt.u32.totalorder %s934_s23, %s1208_s7 }
  0x48   :  { %p940_p6 = pnand %p938_p5, %p935_p4 }
  0x4a   :  { %943 = shalt.err (!%p940_p6)
}
  0x4b   :  { %s944_s12 = scalar_lea.vmem %s78_s18, 1024  ;;  %p949_p8 = scmp.lt.s32.totalorder %s78_s18, %s78_s18 }
  0x4c   :  { %p945_p7 = scmp.ne.s32.totalorder %s78_s18, %s944_s12  ;;  %p950_p9 = scmp.lt.s32.totalorder %s944_s12, %s944_s12 }
  0x4e   :  { %p951_p10 = por %p950_p9, %p949_p8 }
  0x50   :  { %p952_p11 = pnand %p951_p10, %p945_p7 }
  0x52   :  { %955 = shalt.err (!%p952_p11)
}
  0x53   :  { %83 = dma.hbm_to_vmem [thread:$0]  %s1208_s7, 1024, %s78_s18, [#allocation9], %s988_s21, %s988_s21, %s989_s22  }
  0x54   :  { %978 = dma.done.wait [#allocation3], 128  }
  0x55   :  { %979 = vsyncadd [#allocation3], 4294967168 }
  0x56   :  { %980 = dma.done.wait [#allocation6], 2048  }
  0x57   :  { %981 = vsyncadd [#allocation6], 4294965248 }
  0x58   :  { %982 = dma.done.wait [#allocation9], 2048  }
  0x59   :  { %983 = vsyncadd [#allocation9], 4294965248  ;;  %v993_v0 = vmov 0.0   ;;  %vm994_vm0 = vmmov 0   ;;  %v789_v1 = vld [vmem:[#allocation5] sm:$0xff]   ;;  %v790_v2 = vld [vmem:[#allocation5 + $0x8] sm:$0xff]  }
  0x5a   :  { %697 = vmatprep.subr.bf16.mxu0 %v993_v0  ;;  %713 = vmatprep.mubr.msk.bf16.mxu0 %vm994_vm0, %v993_v0  ;;  %v791_v3 = vld [vmem:[#allocation5 + $0x10] sm:$0xff]   ;;  %v792_v4 = vld [vmem:[#allocation5 + $0x18] sm:$0xff]   ;;  %v793_v5 = vld [vmem:[#allocation5 + $0x20] sm:$0xff]   ;;  %s995_s29 = smov [#allocation11]  }
  0x5b   :  { %717 = vmatprep.subr.bf16.mxu1 %v993_v0  ;;  %733 = vmatprep.mubr.msk.bf16.mxu1 %vm994_vm0, %v993_v0  ;;  %v794_v6 = vld [vmem:[#allocation5 + $0x28] sm:$0xff]   ;;  %v795_v7 = vld [vmem:[#allocation5 + $0x30] sm:$0xff]   ;;  %v796_v8 = vld [vmem:[#allocation5 + $0x38] sm:$0xff]   ;;  %s604_s30 = sshll.u32 %s995_s29, 4  ;;  %s605_s30 = int_to_ptr.vmem [resolvable:$true] %s604_s30 }
  0x5c   :  { %698 = vmatpush3.bf16.msra.mxu0 %v789_v1  ;;  %v797_v9 = vld [vmem:[#allocation2] sm:$0xff]   ;;  %v798_v10 = vld [vmem:[#allocation7] sm:$0xff]   ;;  %v799_v11 = vld [vmem:[#allocation7 + $0x8] sm:$0xff]   ;;  %s956_s11 = scalar_lea.vmem %s605_s30, 256  ;;  %p961_p13 = scmp.lt.s32.totalorder %s605_s30, %s605_s30 }
  0x5d   :  { %699 = vmatprep.subr.bf16.mxu0 %v993_v0  ;;  %718 = vmatpush3.bf16.msra.mxu1 %v798_v10  ;;  %v800_v12 = vld [vmem:[#allocation7 + $0x10] sm:$0xff]   ;;  %v801_v13 = vld [vmem:[#allocation7 + $0x18] sm:$0xff]   ;;  %v802_v14 = vld [vmem:[#allocation7 + $0x20] sm:$0xff]   ;;  %p957_p12 = scmp.ne.s32.totalorder %s605_s30, %s956_s11  ;;  %p962_p0 = scmp.lt.s32.totalorder %s956_s11, %s956_s11 }
  0x5e   :  { %719 = vmatprep.subr.bf16.mxu1 %v993_v0  ;;  %v803_v15 = vld [vmem:[#allocation7 + $0x28] sm:$0xff]   ;;  %v804_v16 = vld [vmem:[#allocation7 + $0x30] sm:$0xff]   ;;  %v805_v17 = vld [vmem:[#allocation7 + $0x38] sm:$0xff]  }
  0x5f   :  { %v618_v18 = vld [vmem:[%s1203_s2] ss:$0 sm:$0xff]  ;;  %v806_v34 = vld [vmem:[#allocation8] sm:$0xff]   ;;  %v807_v35 = vld [vmem:[#allocation8 + $0x8] sm:$0xff]   ;;  %p963_p1 = por %p962_p0, %p961_p13 }
  0x60   :  { %700 = vmatpush3.bf16.msra.mxu0 %v790_v2  ;;  %v808_v36 = vld [vmem:[#allocation8 + $0x10] sm:$0xff]   ;;  %v809_v37 = vld [vmem:[#allocation8 + $0x18] sm:$0xff]   ;;  %v810_v38 = vld [vmem:[#allocation8 + $0x20] sm:$0xff]  }
  0x61   :  { %701 = vmatprep.subr.bf16.mxu0 %v993_v0  ;;  %720 = vmatpush3.bf16.msra.mxu1 %v799_v11  ;;  %v811_v39 = vld [vmem:[#allocation8 + $0x28] sm:$0xff]   ;;  %v812_v40 = vld [vmem:[#allocation8 + $0x30] sm:$0xff]   ;;  %v813_v41 = vld [vmem:[#allocation8 + $0x38] sm:$0xff]   ;;  %p964_p2 = pnand %p963_p1, %p957_p12 }
  0x62   :  { %721 = vmatprep.subr.bf16.mxu1 %v993_v0  ;;  %v630_v42 = vld [vmem:[%s1205_s4] ss:$0 sm:$0xff]  ;;  %v814_v58 = vld [vmem:[#allocation10] sm:$0xff]   ;;  %v815_v59 = vld [vmem:[#allocation10 + $0x8] sm:$0xff]  }
  0x63   :  { %v816_v60 = vld [vmem:[#allocation10 + $0x10] sm:$0xff]   ;;  %v817_v61 = vld [vmem:[#allocation10 + $0x18] sm:$0xff]   ;;  %v818_v62 = vld [vmem:[#allocation10 + $0x20] sm:$0xff]  }
  0x64   :  { %702 = vmatpush3.bf16.msra.mxu0 %v791_v3  ;;  %v819_v63 = vld [vmem:[#allocation10 + $0x28] sm:$0xff]   ;;  %v820_v1 = vld [vmem:[#allocation10 + $0x30] sm:$0xff]   ;;  %v821_v2 = vld [vmem:[#allocation10 + $0x38] sm:$0xff]  }
  0x65   :  { %703 = vmatprep.subr.bf16.mxu0 %v993_v0  ;;  %722 = vmatpush3.bf16.msra.mxu1 %v800_v12  ;;  %v641_v3 = vld [vmem:[%s1207_s6] ss:$0 sm:$0xff] }
  0x66   :  { %723 = vmatprep.subr.bf16.mxu1 %v993_v0 }
  0x68   :  { %704 = vmatpush3.bf16.msra.mxu0 %v792_v4 }
  0x69   :  { %705 = vmatprep.subr.bf16.mxu0 %v993_v0  ;;  %724 = vmatpush3.bf16.msra.mxu1 %v801_v13 }
  0x6a   :  { %725 = vmatprep.subr.bf16.mxu1 %v993_v0 }
  0x6c   :  { %706 = vmatpush3.bf16.msra.mxu0 %v793_v5 }
  0x6d   :  { %707 = vmatprep.subr.bf16.mxu0 %v993_v0  ;;  %726 = vmatpush3.bf16.msra.mxu1 %v802_v14 }
  0x6e   :  { %727 = vmatprep.subr.bf16.mxu1 %v993_v0 }
  0x70   :  { %708 = vmatpush3.bf16.msra.mxu0 %v794_v6 }
  0x71   :  { %709 = vmatprep.subr.bf16.mxu0 %v993_v0  ;;  %728 = vmatpush3.bf16.msra.mxu1 %v803_v15 }
  0x72   :  { %729 = vmatprep.subr.bf16.mxu1 %v993_v0 }
  0x74   :  { %710 = vmatpush3.bf16.msra.mxu0 %v795_v7 }
  0x75   :  { %711 = vmatprep.subr.bf16.mxu0 %v993_v0  ;;  %730 = vmatpush3.bf16.msra.mxu1 %v804_v16 }
  0x76   :  { %731 = vmatprep.subr.bf16.mxu1 %v993_v0 }
  0x78   :  { %712 = vmatpush3.bf16.msra.mxu0 %v796_v8 }
  0x79   :  { %737 = vmatprep.subr.bf16.mxu0 %v993_v0  ;;  %732 = vmatpush3.bf16.msra.mxu1 %v805_v17 }
  0x7a   :  { %757 = vmatprep.subr.bf16.mxu1 %v993_v0 }
  0x7b   :  { %714 = vmatmul.mubr.bf16.vlgmr.msra.gmra.mrb[0].mxu0 %v797_v9 }
  0x7c   :  { %753 = vmatprep.mubr.msk.bf16.mxu0 %vm994_vm0, %v993_v0  ;;  %738 = vmatpush3.bf16.msra.mxu0 %v806_v34 }
  0x7d   :  { %739 = vmatprep.subr.bf16.mxu0 %v993_v0 }
  0x80   :  { %740 = vmatpush3.bf16.msra.mxu0 %v807_v35 }
  0x81   :  { %741 = vmatprep.subr.bf16.mxu0 %v993_v0 }
  0x84   :  { %742 = vmatpush3.bf16.msra.mxu0 %v808_v36 }
  0x85   :  { %743 = vmatprep.subr.bf16.mxu0 %v993_v0 }
  0x88   :  { %744 = vmatpush3.bf16.msra.mxu0 %v809_v37 }
  0x89   :  { %745 = vmatprep.subr.bf16.mxu0 %v993_v0 }
  0x8c   :  { %746 = vmatpush3.bf16.msra.mxu0 %v810_v38 }
  0x8d   :  { %747 = vmatprep.subr.bf16.mxu0 %v993_v0 }
  0x90   :  { %748 = vmatpush3.bf16.msra.mxu0 %v811_v39 }
  0x91   :  { %749 = vmatprep.subr.bf16.mxu0 %v993_v0 }
  0x94   :  { %750 = vmatpush3.bf16.msra.mxu0 %v812_v40 }
  0x95   :  { %751 = vmatprep.subr.bf16.mxu0 %v993_v0 }
  0x98   :  { %752 = vmatpush3.bf16.msra.mxu0 %v813_v41 }
 0x14e   :  { %v215_v19 = vpop.f32.mrb[0].mxu0 }
 0x14f   :  { %v216_v20 = vadd.f32 %v618_v18, %v215_v19  ;;  %v715_v21 = vpop.f32.mrb[1].mxu0 }
 0x150   :  { %v218_v22 = vpop.f32.mrb[2].mxu0 }
 0x151   :  { %v628_v23 = vmul.f32 -1.442695, %v216_v20  ;;  %v219_v24 = vadd.f32 %v618_v18, %v218_v22  ;;  %v716_v25 = vpop.f32.mrb[3].mxu0  ;;  %v652_v18 = vld [vmem:[%s1209_s8] ss:$0 sm:$0xff] }
 0x153   :  { %822 = vpow2.f32 %v628_v23  ;;  %v629_v26 = vmul.f32 -1.442695, %v219_v24 }
 0x155   :  { %824 = vpow2.f32 %v629_v26 }
 0x15d   :  { %v823_v27 = vpop.eup %822 }
 0x15e   :  { %v228_v28 = vadd.f32 1.0, %v823_v27 }
 0x15f   :  { %v825_v29 = vpop.eup %824 }
 0x160   :  { %v229_v30 = vadd.f32 1.0, %v825_v29  ;;  %826 = vrcp.f32 %v228_v28 }
 0x162   :  { %828 = vrcp.f32 %v229_v30 }
 0x16a   :  { %v827_v31 = vpop.eup %826 }
 0x16c   :  { %v829_v32 = vpop.eup %828 }
 0x16d   :  { %v234_v33 = vpack.c.bf16 %v829_v32, %v827_v31 }
 0x16f   :  { %734 = vmatmul.mubr.bf16.vlgmr.msra.gmra.mrb[0].mxu1 %v234_v33 }
 0x170   :  { %773 = vmatprep.mubr.msk.bf16.mxu1 %vm994_vm0, %v993_v0  ;;  %758 = vmatpush3.bf16.msra.mxu1 %v814_v58 }
 0x171   :  { %759 = vmatprep.subr.bf16.mxu1 %v993_v0 }
 0x174   :  { %760 = vmatpush3.bf16.msra.mxu1 %v815_v59 }
 0x175   :  { %761 = vmatprep.subr.bf16.mxu1 %v993_v0 }
 0x178   :  { %762 = vmatpush3.bf16.msra.mxu1 %v816_v60 }
 0x179   :  { %763 = vmatprep.subr.bf16.mxu1 %v993_v0 }
 0x17c   :  { %764 = vmatpush3.bf16.msra.mxu1 %v817_v61 }
 0x17d   :  { %765 = vmatprep.subr.bf16.mxu1 %v993_v0 }
 0x180   :  { %766 = vmatpush3.bf16.msra.mxu1 %v818_v62 }
 0x181   :  { %767 = vmatprep.subr.bf16.mxu1 %v993_v0 }
 0x184   :  { %768 = vmatpush3.bf16.msra.mxu1 %v819_v63 }
 0x185   :  { %769 = vmatprep.subr.bf16.mxu1 %v993_v0 }
 0x188   :  { %770 = vmatpush3.bf16.msra.mxu1 %v820_v1 }
 0x189   :  { %771 = vmatprep.subr.bf16.mxu1 %v993_v0 }
 0x18c   :  { %772 = vmatpush3.bf16.msra.mxu1 %v821_v2 }
 0x242   :  { %v340_v43 = vpop.f32.mrb[0].mxu1 }
 0x243   :  { %v341_v44 = vadd.f32 %v630_v42, %v340_v43  ;;  %v735_v45 = vpop.f32.mrb[1].mxu1 }
 0x244   :  { %v343_v46 = vpop.f32.mrb[2].mxu1 }
 0x245   :  { %v639_v47 = vmul.f32 -1.442695, %v341_v44  ;;  %v344_v48 = vadd.f32 %v630_v42, %v343_v46  ;;  %v736_v49 = vpop.f32.mrb[3].mxu1 }
 0x247   :  { %830 = vpow2.f32 %v639_v47  ;;  %v640_v50 = vmul.f32 -1.442695, %v344_v48 }
 0x249   :  { %832 = vpow2.f32 %v640_v50 }
 0x251   :  { %v831_v51 = vpop.eup %830 }
 0x252   :  { %v353_v52 = vadd.f32 1.0, %v831_v51 }
 0x253   :  { %v833_v53 = vpop.eup %832 }
 0x254   :  { %v354_v54 = vadd.f32 1.0, %v833_v53  ;;  %834 = vrcp.f32 %v353_v52 }
 0x256   :  { %836 = vrcp.f32 %v354_v54 }
 0x25e   :  { %v835_v55 = vpop.eup %834 }
 0x260   :  { %v837_v56 = vpop.eup %836 }
 0x261   :  { %v359_v57 = vpack.c.bf16 %v837_v56, %v835_v55 }
 0x263   :  { %754 = vmatmul.mubr.bf16.vlgmr.msra.gmra.mrb[4].mxu0 %v359_v57 }
 0x336   :  { %v465_v4 = vpop.f32.mrb[4].mxu0 }
 0x337   :  { %v466_v5 = vadd.f32 %v641_v3, %v465_v4  ;;  %v755_v6 = vpop.f32.mrb[5].mxu0 }
 0x338   :  { %v468_v7 = vpop.f32.mrb[6].mxu0 }
 0x339   :  { %v650_v8 = vmul.f32 -1.442695, %v466_v5  ;;  %v469_v9 = vadd.f32 %v641_v3, %v468_v7  ;;  %v756_v10 = vpop.f32.mrb[7].mxu0 }
 0x33b   :  { %838 = vpow2.f32 %v650_v8  ;;  %v651_v11 = vmul.f32 -1.442695, %v469_v9 }
 0x33d   :  { %840 = vpow2.f32 %v651_v11 }
 0x345   :  { %v839_v12 = vpop.eup %838 }
 0x346   :  { %v478_v13 = vadd.f32 1.0, %v839_v12 }
 0x347   :  { %v841_v14 = vpop.eup %840 }
 0x348   :  { %v479_v15 = vadd.f32 1.0, %v841_v14  ;;  %842 = vrcp.f32 %v478_v13 }
 0x34a   :  { %844 = vrcp.f32 %v479_v15 }
 0x352   :  { %v843_v0 = vpop.eup %842 }
 0x354   :  { %v845_v16 = vpop.eup %844 }
 0x355   :  { %v484_v17 = vpack.c.bf16 %v845_v16, %v843_v0 }
 0x357   :  { %774 = vmatmul.mubr.bf16.vlgmr.msra.gmra.mrb[4].mxu1 %v484_v17 }
 0x42a   :  { %v590_v19 = vpop.f32.mrb[4].mxu1 }
 0x42b   :  { %v591_v20 = vadd.f32 %v652_v18, %v590_v19  ;;  %v775_v21 = vpop.f32.mrb[5].mxu1 }
 0x42c   :  { %v593_v22 = vpop.f32.mrb[6].mxu1 }
 0x42d   :  { %597 = vst [vmem:[#allocation11] sm:$0xff] %v591_v20  ;;  %v594_v23 = vadd.f32 %v652_v18, %v593_v22  ;;  %v776_v24 = vpop.f32.mrb[7].mxu1 }
 0x42f   :  { %598 = vst [vmem:[#allocation11 + $0x8] sm:$0xff] %v594_v23 }
 0x430   :  { %967 = shalt.err (!%p964_p2)
}
 0x431   :  { %s968_s1 = scalar_lea.hbm %s1210_s9, 256 }
 0x432   :  { %p969_p3 = scmp.ne.s32.totalorder %s1210_s9, %s968_s1  ;;  %p972_p4 = scmp.lt.u32.totalorder %s968_s1, %s1210_s9 }
 0x434   :  { %p974_p5 = pnand %p972_p4, %p969_p3 }
 0x436   :  { %977 = shalt.err (!%p974_p5)
}
 0x437   :  { %s996_s16 = smov 128   ;;  %s997_s18 = smov 8  }
 0x438   :  { %610 = dma.vmem_to_hbm [thread:$0]  %s605_s30, 256, %s1210_s9, [#allocation4], %s996_s16, %s996_s16, %s997_s18  }
 0x439   :  { %984 = dma.done.wait [#allocation4], 256  }
 0x43a   :  { %985 = vsyncadd [#allocation4], 4294967040 }
 0x43b   :  { %614 = vsyncpa [#allocation3], 1 }
 0x43c   :  { %615 = vsyncpa [#allocation6], 1 }
 0x43d   :  { %616 = vsyncpa [#allocation9], 1 }
 0x43e   :  { %617 = vsyncpa [#allocation4], 1 }

</bundles_post_ra>
